<compile_context>
chip_gen: v7x
topology: tpu7x:2x2x1
jax: 0.10.0
libtpu: 0.0.40
codegen_flags: <defaults>
</compile_context>

<pallas_src>
import functools

import jax
import jax.numpy as jnp
from jax import lax
from jax.experimental import pallas as pl
from jax.experimental.pallas import tpu as pltpu


def _round_up(v, m):
    return ((v + m - 1) // m) * m


def _mlp_block_kernel(x_ref, w_ref, b_ref, g_ref, beta_ref, o_ref, *, eps):
    # x_ref   : (tm, in_f_pad)       row tile, native dtype
    # w_ref   : (in_f_pad, out_f)    full weight, resident across the grid
    # b_ref   : (1, out_f)           Linear bias
    # g_ref   : (1, out_f)           LayerNorm gamma
    # beta_ref: (1, out_f)           LayerNorm beta
    # o_ref   : (tm, out_f)
    b = b_ref[...].astype(jnp.float32)
    g = g_ref[...].astype(jnp.float32)
    beta = beta_ref[...].astype(jnp.float32)

    # Linear: MXU consumes native-dtype operands, accumulates in f32.
    y = jnp.dot(x_ref[...], w_ref[...], preferred_element_type=jnp.float32) + b

    # LayerNorm over the feature (last) axis — full out_features is in the tile.
    mean = jnp.mean(y, axis=-1, keepdims=True)
    centered = y - mean
    var = jnp.mean(centered * centered, axis=-1, keepdims=True)
    scale = g * lax.rsqrt(var + eps)          # gamma folded into the scale
    y_norm = centered * scale + beta

    # ReLU + store in the activation dtype.
    o_ref[...] = jnp.maximum(y_norm, 0.0).astype(o_ref.dtype)


def decoder_mlp_block(x, weight, bias, gamma, beta, *, eps=1e-5, tm=512):
    """x: (B, frames, in_features) -> (B, frames, out_features)."""
    B, F, in_f = x.shape
    out_f = weight.shape[1]
    rows = B * F

    # Lane-dense K: pad in_features to a multiple of 128. Zero-padded x columns
    # (and weight rows) contribute nothing, so the matmul result is exact.
    in_f_pad = max(128, _round_up(in_f, 128))

    # Row tile: large & sublane-aligned, but never larger than the (padded)
    # number of rows. Rows are padded in the wrapper -> no divisibility assert.
    tm_eff = min(_round_up(tm, 8), _round_up(rows, 8))
    rows_pad = _round_up(rows, tm_eff)

    x2d = x.reshape(rows, in_f)
    if rows_pad != rows or in_f_pad != in_f:
        x2d = jnp.pad(x2d, ((0, rows_pad - rows), (0, in_f_pad - in_f)))
    w_p = weight if in_f_pad == in_f else jnp.pad(
        weight, ((0, in_f_pad - in_f), (0, 0)))

    bias2d = bias.reshape(1, out_f)
    gamma2d = gamma.reshape(1, out_f)
    beta2d = beta.reshape(1, out_f)

    kernel = functools.partial(_mlp_block_kernel, eps=eps)

    # VMEM footprint per step (double-buffered x/out + resident weight) is a
    # few MB for typical out_features=512, comfortably inside the default
    # scoped VMEM limit on v5e/v6e/v7x, so no vmem_limit_bytes override needed.
    out2d = pl.pallas_call(
        kernel,
        out_shape=jax.ShapeDtypeStruct((rows_pad, out_f), x.dtype),
        grid_spec=pltpu.PrefetchScalarGridSpec(
            num_scalar_prefetch=0,
            grid=(rows_pad // tm_eff,),
            in_specs=[
                pl.BlockSpec((tm_eff, in_f_pad), lambda i: (i, 0)),   # x rows
                pl.BlockSpec((in_f_pad, out_f), lambda i: (0, 0)),    # weight
                pl.BlockSpec((1, out_f), lambda i: (0, 0)),           # bias
                pl.BlockSpec((1, out_f), lambda i: (0, 0)),           # gamma
                pl.BlockSpec((1, out_f), lambda i: (0, 0)),           # beta
            ],
            out_specs=pl.BlockSpec((tm_eff, out_f), lambda i: (i, 0)),
        ),
        compiler_params=pltpu.CompilerParams(
            dimension_semantics=("parallel",),   # row-tile axis shards over TCs
        ),
    )(x2d, w_p, bias2d, gamma2d, beta2d)

    return out2d[:rows].reshape(B, F, out_f)


if __name__ == "__main__":
    # Small shapes consistent with the module's forward:
    # (batch*voices, frames, in_features) -> (batch*voices, frames, out_features)
    BV, FRAMES, IN_F, OUT_F = 2, 8, 32, 512   # out_features matches module default

    key = jax.random.PRNGKey(0)
    kx, kw, kb = jax.random.split(key, 3)

    x = jax.random.normal(kx, (BV, FRAMES, IN_F), dtype=jnp.float32)

    # Deterministic parameter init (PyTorch-style uniform ±1/sqrt(in_features))
    bound = 1.0 / (IN_F ** 0.5)
    weight = jax.random.uniform(kw, (IN_F, OUT_F), minval=-bound, maxval=bound,
                                dtype=jnp.float32)
    bias = jax.random.uniform(kb, (OUT_F,), minval=-bound, maxval=bound,
                              dtype=jnp.float32)
    gamma = jnp.ones((OUT_F,), dtype=jnp.float32)   # nn.LayerNorm weight init
    beta = jnp.zeros((OUT_F,), dtype=jnp.float32)   # nn.LayerNorm bias init

    out = decoder_mlp_block(x, weight, bias, gamma, beta)
    out = jax.block_until_ready(out)

    # Pure-JAX reference check
    ref = x @ weight + bias
    mean = ref.mean(axis=-1, keepdims=True)
    var = ((ref - mean) ** 2).mean(axis=-1, keepdims=True)
    ref = (ref - mean) / jnp.sqrt(var + 1e-5) * gamma + beta
    ref = jnp.maximum(ref, 0.0)
    assert out.shape == (BV, FRAMES, OUT_F)
    assert jnp.allclose(out, ref, atol=1e-4, rtol=1e-4)

    print("KERNEL_OK")
</pallas_src>

<mosaic_0001>
module attributes {stable_mosaic.version = 11 : i64} {
  func.func @_mlp_block_kernel(%arg0: i32, %arg1: memref<16x128xf32, #tpu.memory_space<vmem>>, %arg2: memref<128x512xf32, #tpu.memory_space<vmem>>, %arg3: memref<1x512xf32, #tpu.memory_space<vmem>>, %arg4: memref<1x512xf32, #tpu.memory_space<vmem>>, %arg5: memref<1x512xf32, #tpu.memory_space<vmem>>, %arg6: memref<16x512xf32, #tpu.memory_space<vmem>>) attributes {dimension_semantics = [#tpu.dimension_semantics<parallel>], iteration_bounds = array<i64: 1>, scalar_prefetch = 0 : i64, scratch_operands = 0 : i64, tpu.core_type = #tpu.core_type<tc>, window_params = [{transform_indices = @transform_0, window_bounds = array<i64: 16, 128>}, {pipeline_mode = #tpu.pipeline_mode<synchronous>, transform_indices = @transform_1, window_bounds = array<i64: 128, 512>}, {pipeline_mode = #tpu.pipeline_mode<synchronous>, transform_indices = @transform_2, window_bounds = array<i64: 1, 512>}, {pipeline_mode = #tpu.pipeline_mode<synchronous>, transform_indices = @transform_3, window_bounds = array<i64: 1, 512>}, {pipeline_mode = #tpu.pipeline_mode<synchronous>, transform_indices = @transform_4, window_bounds = array<i64: 1, 512>}, {transform_indices = @transform_5, window_bounds = array<i64: 16, 512>}]} {
    %c0 = arith.constant 0 : index
    %c0_0 = arith.constant 0 : index
    %0 = vector.load %arg3[%c0, %c0_0] : memref<1x512xf32, #tpu.memory_space<vmem>>, vector<1x512xf32>
    %c0_1 = arith.constant 0 : index
    %c0_2 = arith.constant 0 : index
    %1 = vector.load %arg4[%c0_1, %c0_2] : memref<1x512xf32, #tpu.memory_space<vmem>>, vector<1x512xf32>
    %c0_3 = arith.constant 0 : index
    %c0_4 = arith.constant 0 : index
    %2 = vector.load %arg5[%c0_3, %c0_4] : memref<1x512xf32, #tpu.memory_space<vmem>>, vector<1x512xf32>
    %c0_5 = arith.constant 0 : index
    %c0_6 = arith.constant 0 : index
    %3 = vector.load %arg1[%c0_5, %c0_6] : memref<16x128xf32, #tpu.memory_space<vmem>>, vector<16x128xf32>
    %c0_7 = arith.constant 0 : index
    %c0_8 = arith.constant 0 : index
    %4 = vector.load %arg2[%c0_7, %c0_8] : memref<128x512xf32, #tpu.memory_space<vmem>>, vector<128x512xf32>
    %cst = arith.constant dense<0.000000e+00> : vector<16x512xf32>
    %5 = tpu.matmul %3, %4, %cst {dimension_numbers = #tpu.dot_dimension_numbers<[1], [0], [0], [1], [0, 0, 1, 1], [], []>} : vector<16x128xf32>, vector<128x512xf32>, vector<16x512xf32> -> vector<16x512xf32>
    %6 = vector.broadcast %0 : vector<1x512xf32> to vector<16x512xf32>
    %7 = arith.addf %5, %6 : vector<16x512xf32>
    %cst_9 = arith.constant dense<0.000000e+00> : vector<16xf32>
    %8 = vector.multi_reduction <add>, %7, %cst_9 [1] : vector<16x512xf32> to vector<16xf32>
    %9 = vector.shape_cast %8 : vector<16xf32> to vector<16x1xf32>
    %cst_10 = arith.constant 5.120000e+02 : f32
    %10 = vector.broadcast %cst_10 : f32 to vector<16x1xf32>
    %11 = arith.divf %9, %10 : vector<16x1xf32>
    %12 = vector.broadcast %11 : vector<16x1xf32> to vector<16x512xf32>
    %13 = arith.subf %7, %12 : vector<16x512xf32>
    %14 = arith.mulf %13, %13 : vector<16x512xf32>
    %cst_11 = arith.constant dense<0.000000e+00> : vector<16xf32>
    %15 = vector.multi_reduction <add>, %14, %cst_11 [1] : vector<16x512xf32> to vector<16xf32>
    %16 = vector.shape_cast %15 : vector<16xf32> to vector<16x1xf32>
    %cst_12 = arith.constant 5.120000e+02 : f32
    %17 = vector.broadcast %cst_12 : f32 to vector<16x1xf32>
    %18 = arith.divf %16, %17 : vector<16x1xf32>
    %cst_13 = arith.constant 9.99999974E-6 : f32
    %19 = vector.broadcast %cst_13 : f32 to vector<16x1xf32>
    %20 = arith.addf %18, %19 : vector<16x1xf32>
    %21 = math.rsqrt %20 : vector<16x1xf32>
    %22 = vector.broadcast %1 : vector<1x512xf32> to vector<16x512xf32>
    %23 = vector.broadcast %21 : vector<16x1xf32> to vector<16x512xf32>
    %24 = arith.mulf %22, %23 : vector<16x512xf32>
    %25 = arith.mulf %13, %24 : vector<16x512xf32>
    %26 = vector.broadcast %2 : vector<1x512xf32> to vector<16x512xf32>
    %27 = arith.addf %25, %26 : vector<16x512xf32>
    %cst_14 = arith.constant 0.000000e+00 : f32
    %28 = vector.broadcast %cst_14 : f32 to vector<16x512xf32>
    %29 = arith.maximumf %27, %28 : vector<16x512xf32>
    %c0_15 = arith.constant 0 : index
    %c0_16 = arith.constant 0 : index
    %30 = vector.load %arg6[%c0_15, %c0_16] : memref<16x512xf32, #tpu.memory_space<vmem>>, vector<16x512xf32>
    tpu.vector_store %arg6[%c0_15, %c0_16], %29 {strides = array<i32>} : memref<16x512xf32, #tpu.memory_space<vmem>>, vector<16x512xf32>,
    return
  }
  func.func @transform_0(%arg0: i32) -> (i32, i32) {
    %c0_i32 = arith.constant 0 : i32
    %c0_i32_0 = arith.constant 0 : i32
    return %arg0, %c0_i32 : i32, i32
  }
  func.func @transform_1(%arg0: i32) -> (i32, i32) {
    %c0_i32 = arith.constant 0 : i32
    %c0_i32_0 = arith.constant 0 : i32
    %c0_i32_1 = arith.constant 0 : i32
    return %c0_i32, %c0_i32_0 : i32, i32
  }
  func.func @transform_2(%arg0: i32) -> (i32, i32) {
    %c0_i32 = arith.constant 0 : i32
    %c0_i32_0 = arith.constant 0 : i32
    %c0_i32_1 = arith.constant 0 : i32
    return %c0_i32, %c0_i32_0 : i32, i32
  }
  func.func @transform_3(%arg0: i32) -> (i32, i32) {
    %c0_i32 = arith.constant 0 : i32
    %c0_i32_0 = arith.constant 0 : i32
    %c0_i32_1 = arith.constant 0 : i32
    return %c0_i32, %c0_i32_0 : i32, i32
  }
  func.func @transform_4(%arg0: i32) -> (i32, i32) {
    %c0_i32 = arith.constant 0 : i32
    %c0_i32_0 = arith.constant 0 : i32
    %c0_i32_1 = arith.constant 0 : i32
    return %c0_i32, %c0_i32_0 : i32, i32
  }
  func.func @transform_5(%arg0: i32) -> (i32, i32) {
    %c0_i32 = arith.constant 0 : i32
    %c0_i32_0 = arith.constant 0 : i32
    return %arg0, %c0_i32 : i32, i32
  }
}

</mosaic_0001>

<bundles_post_ra>
// kernel: tpu_custom_call.1
= control target key start
LH: loop header
LB: loop body
LE: loop exit
PB: predicated region body
PF: predicated region fallthrough
CT: control target
= control target key end

     0   :  { %10 = vsyncpa [#allocation3], 0  ;;  %s699_s0 = inlined_call_operand.hbm [shape: f32[16,128], index: 0, kind: input, shape index: {}]   ;;  %s700_s1 = inlined_call_operand.hbm [shape: f32[128,512], index: 1, kind: input, shape index: {}]   ;;  %s701_s2 = inlined_call_operand.vmem [shape: f32[1,512], index: 2, kind: input, shape index: {}]   ;;  %s702_s3 = inlined_call_operand.vmem [shape: f32[1,512], index: 3, kind: input, shape index: {}]   ;;  %s703_s4 = inlined_call_operand.vmem [shape: f32[1,512], index: 4, kind: input, shape index: {}]   ;;  %s704_s5 = inlined_call_operand.hbm [shape: f32[16,512], index: 5, kind: output, shape index: {}]  }
   0x1   :  { %11 = vsyncpa [#allocation6], 0 }
   0x2   :  { %12 = vsyncpa [#allocation4], 0  ;;  %s586_s18 = smov [#allocation2]   ;;  %s514_s22 = scalar_lea.hbm %s699_s0, 256 }
   0x3   :  { %s18_s19 = sshll.u32 %s586_s18, 4  ;;  %p515_p0 = scmp.ne.s32.totalorder %s699_s0, %s514_s22  ;;  %s19_s19 = int_to_ptr.vmem [resolvable:$true] %s18_s19 }
   0x4   :  { %p518_p1 = scmp.lt.u32.totalorder %s514_s22, %s699_s0 }
   0x6   :  { %p520_p2 = pnand %p518_p1, %p515_p0 }
   0x8   :  { %523 = shalt.err (!%p520_p2)
}
   0x9   :  { %s524_s27 = scalar_lea.vmem %s19_s19, 256  ;;  %p529_p4 = scmp.lt.s32.totalorder %s19_s19, %s19_s19 }
   0xa   :  { %p525_p3 = scmp.ne.s32.totalorder %s19_s19, %s524_s27  ;;  %p530_p5 = scmp.lt.s32.totalorder %s524_s27, %s524_s27 }
   0xc   :  { %p531_p6 = por %p530_p5, %p529_p4 }
   0xe   :  { %p532_p7 = pnand %p531_p6, %p525_p3 }
  0x10   :  { %535 = shalt.err (!%p532_p7)
}
  0x11   :  { %s587_s28 = smov 128   ;;  %s588_s29 = smov 8  }
  0x12   :  { %24 = dma.hbm_to_vmem [thread:$0]  %s699_s0, 256, %s19_s19, [#allocation3], %s587_s28, %s587_s28, %s588_s29  }
  0x13   :  { %s589_s7 = smov [#allocation5]   ;;  %s536_s11 = scalar_lea.hbm %s700_s1, 8192 }
  0x14   :  { %s30_s8 = sshll.u32 %s589_s7, 4  ;;  %p537_p8 = scmp.ne.s32.totalorder %s700_s1, %s536_s11  ;;  %s31_s8 = int_to_ptr.vmem [resolvable:$true] %s30_s8 }
  0x15   :  { %p540_p9 = scmp.lt.u32.totalorder %s536_s11, %s700_s1 }
  0x17   :  { %p542_p10 = pnand %p540_p9, %p537_p8 }
  0x19   :  { %545 = shalt.err (!%p542_p10)
}
  0x1a   :  { %s546_s16 = scalar_lea.vmem %s31_s8, 8192  ;;  %p551_p12 = scmp.lt.s32.totalorder %s31_s8, %s31_s8 }
  0x1b   :  { %p547_p11 = scmp.ne.s32.totalorder %s31_s8, %s546_s16  ;;  %p552_p13 = scmp.lt.s32.totalorder %s546_s16, %s546_s16 }
  0x1d   :  { %p553_p0 = por %p552_p13, %p551_p12 }
  0x1f   :  { %p554_p1 = pnand %p553_p0, %p547_p11 }
  0x21   :  { %557 = shalt.err (!%p554_p1)
}
  0x22   :  { %s590_s0 = smov 512   ;;  %s591_s17 = smov 32  }
  0x23   :  { %36 = dma.hbm_to_vmem [thread:$0]  %s700_s1, 8192, %s31_s8, [#allocation6], %s590_s0, %s590_s0, %s591_s17  }
  0x24   :  { %580 = dma.done.wait [#allocation3], 256  }
  0x25   :  { %581 = vsyncadd [#allocation3], 4294967040 }
  0x26   :  { %582 = dma.done.wait [#allocation6], 8192  }
  0x27   :  { %583 = vsyncadd [#allocation6], 4294959104  ;;  %v592_v0 = vmov 0.0   ;;  %v55_v1 = vld [vmem:[#allocation5 + $0x8] sm:$0xff]  ;;  %v54_v3 = vld [vmem:[#allocation5] sm:$0xff] }
  0x28   :  { %203 = vmatprep.mubr.f32.mxu0 %v592_v0  ;;  %280 = vmatprep.mubr.f32.mxu1 %v592_v0  ;;  %v59_v2 = vld [vmem:[#allocation5 + $0x28] sm:$0xff]  ;;  %v58_v5 = vld [vmem:[#allocation5 + $0x20] sm:$0xff]  ;;  %v57_v6 = vld [vmem:[#allocation5 + $0x18] sm:$0xff] }
  0x29   :  { %v438_v4 = vpack.c.bf16 %v59_v2, %v55_v1  ;;  %v61_v7 = vld [vmem:[#allocation5 + $0x38] sm:$0xff]  ;;  %v440_v8 = vpack.c.bf16 %v58_v5, %v54_v3  ;;  %v56_v10 = vld [vmem:[#allocation5 + $0x10] sm:$0xff]  ;;  %v63_v12 = vld [vmem:[#allocation5 + $0x48] sm:$0xff] }
  0x2a   :  { %v470_v9 = vpack.c.bf16 %v61_v7, %v57_v6  ;;  %v60_v11 = vld [vmem:[#allocation5 + $0x30] sm:$0xff]  ;;  %v67_v14 = vld [vmem:[#allocation5 + $0x68] sm:$0xff]  ;;  %v62_v15 = vld [vmem:[#allocation5 + $0x40] sm:$0xff] }
  0x2b   :  { %439 = vmatprep.subr.bf16.mxu0 %v438_v4  ;;  %v472_v13 = vpack.c.bf16 %v60_v11, %v56_v10  ;;  %v66_v16 = vld [vmem:[#allocation5 + $0x60] sm:$0xff]  ;;  %v442_v17 = vpack.c.bf16 %v67_v14, %v63_v12  ;;  %v65_v19 = vld [vmem:[#allocation5 + $0x58] sm:$0xff]  ;;  %v64_v21 = vld [vmem:[#allocation5 + $0x50] sm:$0xff] }
  0x2c   :  { %441 = vmatpush1.bf16.msra.mxu0 %v440_v8  ;;  %471 = vmatprep.subr.bf16.mxu1 %v470_v9  ;;  %v444_v18 = vpack.c.bf16 %v66_v16, %v62_v15  ;;  %v69_v20 = vld [vmem:[#allocation5 + $0x78] sm:$0xff]  ;;  %v68_v23 = vld [vmem:[#allocation5 + $0x70] sm:$0xff]  ;;  %v71_v24 = vld [vmem:[#allocation5 + $0x88] sm:$0xff] }
  0x2d   :  { %473 = vmatpush1.bf16.msra.mxu1 %v472_v13  ;;  %v474_v22 = vpack.c.bf16 %v69_v20, %v65_v19  ;;  %v75_v25 = vld [vmem:[#allocation5 + $0xa8] sm:$0xff]  ;;  %443 = vmatprep.subr.bf16.mxu0 %v442_v17  ;;  %v476_v26 = vpack.c.bf16 %v68_v23, %v64_v21  ;;  %v70_v28 = vld [vmem:[#allocation5 + $0x80] sm:$0xff]  ;;  %v73_v30 = vld [vmem:[#allocation5 + $0x98] sm:$0xff] }
  0x2e   :  { %v446_v27 = vpack.c.bf16 %v75_v25, %v71_v24  ;;  %v74_v29 = vld [vmem:[#allocation5 + $0xa0] sm:$0xff]  ;;  %v77_v31 = vld [vmem:[#allocation5 + $0xb8] sm:$0xff]  ;;  %v72_v32 = vld [vmem:[#allocation5 + $0x90] sm:$0xff] }
  0x2f   :  { %475 = vmatprep.subr.bf16.mxu1 %v474_v22  ;;  %v76_v33 = vld [vmem:[#allocation5 + $0xb0] sm:$0xff]  ;;  %v448_v34 = vpack.c.bf16 %v74_v29, %v70_v28  ;;  %v478_v35 = vpack.c.bf16 %v77_v31, %v73_v30  ;;  %v79_v36 = vld [vmem:[#allocation5 + $0xc8] sm:$0xff]  ;;  %v78_v38 = vld [vmem:[#allocation5 + $0xc0] sm:$0xff] }
  0x30   :  { %445 = vmatpush1.bf16.msra.mxu0 %v444_v18  ;;  %v83_v37 = vld [vmem:[#allocation5 + $0xe8] sm:$0xff]  ;;  %v480_v39 = vpack.c.bf16 %v76_v33, %v72_v32  ;;  %v82_v41 = vld [vmem:[#allocation5 + $0xe0] sm:$0xff]  ;;  %v81_v42 = vld [vmem:[#allocation5 + $0xd8] sm:$0xff] }
  0x31   :  { %477 = vmatpush1.bf16.msra.mxu1 %v476_v26  ;;  %447 = vmatprep.subr.bf16.mxu0 %v446_v27  ;;  %v450_v40 = vpack.c.bf16 %v83_v37, %v79_v36  ;;  %v85_v43 = vld [vmem:[#allocation5 + $0xf8] sm:$0xff]  ;;  %v80_v45 = vld [vmem:[#allocation5 + $0xd0] sm:$0xff]  ;;  %v87_v47 = vld [vmem:[#allocation5 + $0x108] sm:$0xff]  ;;  %v452_v49 = vpack.c.bf16 %v82_v41, %v78_v38  ;;  %v119_v36 = vlaneseq }
  0x32   :  { %479 = vmatprep.subr.bf16.mxu1 %v478_v35  ;;  %v482_v44 = vpack.c.bf16 %v85_v43, %v81_v42  ;;  %v84_v46 = vld [vmem:[#allocation5 + $0xf0] sm:$0xff]  ;;  %v91_v48 = vld [vmem:[#allocation5 + $0x128] sm:$0xff]  ;;  %v89_v50 = vld [vmem:[#allocation5 + $0x118] sm:$0xff] }
  0x33   :  { %v93_v51 = vld [vmem:[#allocation5 + $0x138] sm:$0xff]  ;;  %v484_v52 = vpack.c.bf16 %v84_v46, %v80_v45  ;;  %v454_v53 = vpack.c.bf16 %v91_v48, %v87_v47  ;;  %v86_v54 = vld [vmem:[#allocation5 + $0x100] sm:$0xff]  ;;  %v88_v56 = vld [vmem:[#allocation5 + $0x110] sm:$0xff]  ;;  %v120_v37 = vshrl.u32 %v119_v36, 7 }
  0x34   :  { %449 = vmatpush1.bf16.msra.mxu0 %v448_v34  ;;  %v90_v55 = vld [vmem:[#allocation5 + $0x120] sm:$0xff]  ;;  %v486_v57 = vpack.c.bf16 %v93_v51, %v89_v50  ;;  %v92_v58 = vld [vmem:[#allocation5 + $0x130] sm:$0xff]  ;;  %v95_v59 = vld [vmem:[#allocation5 + $0x148] sm:$0xff] }
  0x35   :  { %481 = vmatpush1.bf16.msra.mxu1 %v480_v39  ;;  %451 = vmatprep.subr.bf16.mxu0 %v450_v40  ;;  %v99_v60 = vld [vmem:[#allocation5 + $0x168] sm:$0xff]  ;;  %v97_v61 = vld [vmem:[#allocation5 + $0x158] sm:$0xff]  ;;  %v456_v63 = vpack.c.bf16 %v90_v55, %v86_v54  ;;  %v488_v1 = vpack.c.bf16 %v92_v58, %v88_v56  ;;  %v94_v3 = vld [vmem:[#allocation5 + $0x140] sm:$0xff]  ;;  %v655_v38 = vsub.s32 0, %v120_v37  ;;  %v660_v40 = vsub.s32 1, %v120_v37 }
  0x36   :  { %483 = vmatprep.subr.bf16.mxu1 %v482_v44  ;;  %v101_v62 = vld [vmem:[#allocation5 + $0x178] sm:$0xff]  ;;  %v458_v2 = vpack.c.bf16 %v99_v60, %v95_v59  ;;  %v98_v4 = vld [vmem:[#allocation5 + $0x160] sm:$0xff]  ;;  %v96_v5 = vld [vmem:[#allocation5 + $0x150] sm:$0xff]  ;;  %v662_v41 = vsub.s32 2, %v120_v37  ;;  %v667_v44 = vsub.s32 3, %v120_v37 }
  0x37   :  { %v490_v6 = vpack.c.bf16 %v101_v62, %v97_v61  ;;  %v100_v7 = vld [vmem:[#allocation5 + $0x170] sm:$0xff]  ;;  %v103_v8 = vld [vmem:[#allocation5 + $0x188] sm:$0xff]  ;;  %v105_v10 = vld [vmem:[#allocation5 + $0x198] sm:$0xff]  ;;  %v460_v12 = vpack.c.bf16 %v98_v4, %v94_v3 }
  0x38   :  { %453 = vmatpush1.bf16.msra.mxu0 %v452_v49  ;;  %v107_v9 = vld [vmem:[#allocation5 + $0x1a8] sm:$0xff]  ;;  %v109_v11 = vld [vmem:[#allocation5 + $0x1b8] sm:$0xff]  ;;  %v492_v13 = vpack.c.bf16 %v100_v7, %v96_v5  ;;  %v102_v15 = vld [vmem:[#allocation5 + $0x180] sm:$0xff] }
  0x39   :  { %485 = vmatpush1.bf16.msra.mxu1 %v484_v52  ;;  %455 = vmatprep.subr.bf16.mxu0 %v454_v53  ;;  %v462_v14 = vpack.c.bf16 %v107_v9, %v103_v8  ;;  %v106_v16 = vld [vmem:[#allocation5 + $0x1a0] sm:$0xff]  ;;  %v104_v17 = vld [vmem:[#allocation5 + $0x190] sm:$0xff]  ;;  %v494_v18 = vpack.c.bf16 %v109_v11, %v105_v10  ;;  %v111_v20 = vld [vmem:[#allocation5 + $0x1c8] sm:$0xff] }
  0x3a   :  { %487 = vmatprep.subr.bf16.mxu1 %v486_v57  ;;  %v108_v19 = vld [vmem:[#allocation5 + $0x1b0] sm:$0xff]  ;;  %v115_v21 = vld [vmem:[#allocation5 + $0x1e8] sm:$0xff]  ;;  %v113_v22 = vld [vmem:[#allocation5 + $0x1d8] sm:$0xff]  ;;  %v464_v24 = vpack.c.bf16 %v106_v16, %v102_v15 }
  0x3b   :  { %v117_v23 = vld [vmem:[#allocation5 + $0x1f8] sm:$0xff]  ;;  %v496_v25 = vpack.c.bf16 %v108_v19, %v104_v17  ;;  %v466_v26 = vpack.c.bf16 %v115_v21, %v111_v20  ;;  %v110_v27 = vld [vmem:[#allocation5 + $0x1c0] sm:$0xff]  ;;  %v112_v30 = vld [vmem:[#allocation5 + $0x1d0] sm:$0xff] }
  0x3c   :  { %457 = vmatpush1.bf16.msra.mxu0 %v456_v63  ;;  %v114_v28 = vld [vmem:[#allocation5 + $0x1e0] sm:$0xff]  ;;  %v498_v29 = vpack.c.bf16 %v117_v23, %v113_v22  ;;  %v116_v31 = vld [vmem:[#allocation5 + $0x1f0] sm:$0xff]  ;;  %v53_v35 = vld [vmem:[#allocation2 + $0x8] sm:$0xff] }
  0x3d   :  { %489 = vmatpush1.bf16.msra.mxu1 %v488_v1  ;;  %459 = vmatprep.subr.bf16.mxu0 %v458_v2  ;;  %v468_v32 = vpack.c.bf16 %v114_v28, %v110_v27  ;;  %v500_v33 = vpack.c.bf16 %v116_v31, %v112_v30  ;;  %v52_v34 = vld [vmem:[#allocation2] sm:$0xff] }
  0x3e   :  { %491 = vmatprep.subr.bf16.mxu1 %v490_v6  ;;  %v49_v39 = vld [vmem:[%s701_s2] sm:$0xf] }
  0x3f   :  { %v122_v42 = vrot.slane %v49_v39, %v655_v38  ;;  %v126_v43 = vrot.slane %v49_v39, %v660_v40  ;;  %v134_v51 = vrot.slane %v49_v39, %v667_v44  ;;  %v50_v37 = vld [vmem:[%s702_s3] sm:$0xf]  ;;  %s593_s3 = smov [#allocation7]  }
  0x40   :  { %461 = vmatpush1.bf16.msra.mxu0 %v460_v12 }
  0x41   :  { %493 = vmatpush1.bf16.msra.mxu1 %v492_v13  ;;  %463 = vmatprep.subr.bf16.mxu0 %v462_v14 }
  0x42   :  { %495 = vmatprep.subr.bf16.mxu1 %v494_v18 }
  0x44   :  { %465 = vmatpush1.bf16.msra.mxu0 %v464_v24 }
  0x45   :  { %497 = vmatpush1.bf16.msra.mxu1 %v496_v25  ;;  %467 = vmatprep.subr.bf16.mxu0 %v466_v26 }
  0x46   :  { %499 = vmatprep.subr.bf16.mxu1 %v498_v29 }
  0x48   :  { %469 = vmatpush1.bf16.msra.mxu0 %v468_v32 }
  0x49   :  { %501 = vmatpush1.bf16.msra.mxu1 %v500_v33 }
  0x4b   :  { %204 = vmatmul.mubr.f32.vlgmr.msra.gmra.mrb[0].mxu0 %v52_v34 }
  0x4c   :  { %281 = vmatmul.mubr.f32.vlgmr.msra.gmra.mrb[0].mxu1 %v52_v34  ;;  %209 = vmatprep.mubr.f32.mxu0 %v592_v0 }
  0x4d   :  { %286 = vmatprep.mubr.f32.mxu1 %v592_v0  ;;  %v130_v0 = vrot.slane %v49_v39, %v662_v41  ;;  %v342_v39 = vrot.slane %v50_v37, %v655_v38 }
  0x4f   :  { %210 = vmatmul.mubr.f32.gmra.mrb[2].mxu0 %v53_v35 }
  0x50   :  { %287 = vmatmul.mubr.f32.gmra.mrb[2].mxu1 %v53_v35 }
 0x11e   :  { %v205_v45 = vpop.f32.mrb[0].mxu0 }
 0x11f   :  { %v206_v46 = vadd.f32 %v205_v45, %v122_v42  ;;  %v207_v47 = vpop.f32.mrb[1].mxu0  ;;  %v282_v48 = vpop.f32.mrb[0].mxu1  ;;  %v51_v45 = vld [vmem:[%s703_s4] sm:$0xf]  ;;  %s425_s4 = sshll.u32 %s593_s3, 4  ;;  %s426_s4 = int_to_ptr.vmem [resolvable:$true] %s425_s4 }
 0x120   :  { %v208_v49 = vadd.f32 %v207_v47, %v126_v43  ;;  %v283_v50 = vadd.f32 %v282_v48, %v130_v0  ;;  %v284_v52 = vpop.f32.mrb[1].mxu1  ;;  %s558_s24 = scalar_lea.vmem %s426_s4, 1024  ;;  %p563_p3 = scmp.lt.s32.totalorder %s426_s4, %s426_s4 }
 0x121   :  { %v285_v58 = vadd.f32 %v284_v52, %v134_v51  ;;  %v383_v52 = vrot.slane %v51_v45, %v660_v40  ;;  %p559_p2 = scmp.ne.s32.totalorder %s426_s4, %s558_s24  ;;  %p564_p4 = scmp.lt.s32.totalorder %s558_s24, %s558_s24 }
 0x122   :  { %v293_v53 = vadd.f32 %v208_v49, %v206_v46  ;;  %v211_v54 = vpop.f32.mrb[2].mxu0 }
 0x123   :  { %v212_v55 = vadd.f32 %v211_v54, %v122_v42  ;;  %v213_v56 = vpop.f32.mrb[3].mxu0  ;;  %v288_v57 = vpop.f32.mrb[2].mxu1  ;;  %v346_v42 = vrot.slane %v50_v37, %v660_v40  ;;  %v391_v54 = vrot.slane %v51_v45, %v667_v44  ;;  %p565_p5 = por %p564_p4, %p563_p3 }
 0x124   :  { %v214_v59 = vadd.f32 %v213_v56, %v126_v43  ;;  %v289_v60 = vadd.f32 %v288_v57, %v130_v0  ;;  %v290_v61 = vpop.f32.mrb[3].mxu1  ;;  %v294_v62 = vadd.f32 %v293_v53, %v283_v50  ;;  %v350_v43 = vrot.slane %v50_v37, %v662_v41 }
 0x125   :  { %v291_v3 = vadd.f32 %v290_v61, %v134_v51  ;;  %v354_v0 = vrot.slane %v50_v37, %v667_v44  ;;  %v379_v51 = vrot.slane %v51_v45, %v655_v38  ;;  %v387_v53 = vrot.slane %v51_v45, %v662_v41  ;;  %p566_p6 = pnand %p565_p5, %p559_p2 }
 0x126   :  { %v298_v63 = vadd.f32 %v214_v59, %v212_v55  ;;  %v295_v1 = vadd.f32 %v294_v62, %v285_v58 }
 0x128   :  { %v299_v2 = vadd.f32 %v298_v63, %v289_v60  ;;  %296 = vadd.xlane.f32.xlu0 %v295_v1 }
 0x12a   :  { %v300_v4 = vadd.f32 %v299_v2, %v291_v3 }
 0x12c   :  { %301 = vadd.xlane.f32.xlu0 %v300_v4 }
 0x1b5   :  { %v297_v5 = vpop.xlane.xlu0 %296 }
 0x1b6   :  { %v304_v6 = vmul.f32 0.001953125, %v297_v5 }
 0x1b8   :  { %v306_v7 = vsub.f32 %v206_v46, %v304_v6  ;;  %v307_v8 = vsub.f32 %v208_v49, %v304_v6  ;;  %v308_v9 = vsub.f32 %v283_v50, %v304_v6  ;;  %v309_v11 = vsub.f32 %v285_v58, %v304_v6 }
 0x1b9   :  { %v302_v10 = vpop.xlane.xlu0 %301 }
 0x1ba   :  { %v305_v12 = vmul.f32 0.001953125, %v302_v10  ;;  %v314_v13 = vmul.f32 %v306_v7, %v306_v7  ;;  %v315_v14 = vmul.f32 %v307_v8, %v307_v8  ;;  %v316_v15 = vmul.f32 %v308_v9, %v308_v9 }
 0x1bb   :  { %v317_v20 = vmul.f32 %v309_v11, %v309_v11 }
 0x1bc   :  { %v310_v16 = vsub.f32 %v212_v55, %v305_v12  ;;  %v311_v17 = vsub.f32 %v214_v59, %v305_v12  ;;  %v322_v18 = vadd.f32 %v315_v14, %v314_v13  ;;  %v312_v19 = vsub.f32 %v289_v60, %v305_v12 }
 0x1bd   :  { %v313_v22 = vsub.f32 %v291_v3, %v305_v12 }
 0x1be   :  { %v323_v21 = vadd.f32 %v322_v18, %v316_v15  ;;  %v318_v23 = vmul.f32 %v310_v16, %v310_v16  ;;  %v319_v24 = vmul.f32 %v311_v17, %v311_v17  ;;  %v320_v26 = vmul.f32 %v312_v19, %v312_v19 }
 0x1bf   :  { %v321_v28 = vmul.f32 %v313_v22, %v313_v22 }
 0x1c0   :  { %v324_v25 = vadd.f32 %v323_v21, %v317_v20  ;;  %v327_v27 = vadd.f32 %v319_v24, %v318_v23 }
 0x1c2   :  { %325 = vadd.xlane.f32.xlu1 %v324_v25  ;;  %v328_v29 = vadd.f32 %v327_v27, %v320_v26 }
 0x1c4   :  { %v329_v30 = vadd.f32 %v328_v29, %v321_v28 }
 0x1c6   :  { %330 = vadd.xlane.f32.xlu1 %v329_v30 }
 0x24f   :  { %v326_v31 = vpop.xlane.xlu1 %325 }
 0x250   :  { %v332_v32 = vmul.f32 0.001953125, %v326_v31 }
 0x252   :  { %v334_v33 = vadd.f32 1e-05, %v332_v32 }
 0x253   :  { %v331_v34 = vpop.xlane.xlu1 %330 }
 0x254   :  { %510 = vrsqrt.f32 %v334_v33  ;;  %v333_v35 = vmul.f32 0.001953125, %v331_v34 }
 0x256   :  { %v335_v36 = vadd.f32 1e-05, %v333_v35 }
 0x258   :  { %512 = vrsqrt.f32 %v335_v36 }
 0x25e   :  { %v511_v46 = vpop.eup %510 }
 0x25f   :  { %v359_v47 = vmul.f32 %v511_v46, %v342_v39  ;;  %v360_v48 = vmul.f32 %v511_v46, %v346_v42  ;;  %v361_v49 = vmul.f32 %v511_v46, %v350_v43  ;;  %v362_v50 = vmul.f32 %v511_v46, %v354_v0 }
 0x261   :  { %v367_v55 = vmul.f32 %v359_v47, %v306_v7  ;;  %v368_v56 = vmul.f32 %v360_v48, %v307_v8  ;;  %v369_v57 = vmul.f32 %v361_v49, %v308_v9  ;;  %v370_v58 = vmul.f32 %v362_v50, %v309_v11 }
 0x262   :  { %v513_v59 = vpop.eup %512 }
 0x263   :  { %v363_v60 = vmul.f32 %v513_v59, %v342_v39  ;;  %v364_v61 = vmul.f32 %v513_v59, %v346_v42  ;;  %v365_v62 = vmul.f32 %v513_v59, %v350_v43  ;;  %v366_v63 = vmul.f32 %v513_v59, %v354_v0 }
 0x264   :  { %v396_v1 = vadd.f32 %v379_v51, %v367_v55  ;;  %v397_v2 = vadd.f32 %v383_v52, %v368_v56  ;;  %v398_v3 = vadd.f32 %v387_v53, %v369_v57  ;;  %v399_v4 = vadd.f32 %v391_v54, %v370_v58 }
 0x265   :  { %v371_v38 = vmul.f32 %v363_v60, %v310_v16  ;;  %v372_v5 = vmul.f32 %v364_v61, %v311_v17  ;;  %v373_v40 = vmul.f32 %v365_v62, %v312_v19  ;;  %v374_v6 = vmul.f32 %v366_v63, %v313_v22 }
 0x266   :  { %v404_v41 = vmax.f32 %v396_v1, 0.0  ;;  %v405_v10 = vmax.f32 %v397_v2, 0.0  ;;  %v406_v44 = vmax.f32 %v398_v3, 0.0  ;;  %v407_v7 = vmax.f32 %v399_v4, 0.0 }
 0x267   :  { %v400_v8 = vadd.f32 %v379_v51, %v371_v38  ;;  %v401_v9 = vadd.f32 %v383_v52, %v372_v5  ;;  %v402_v11 = vadd.f32 %v387_v53, %v373_v40  ;;  %v403_v12 = vadd.f32 %v391_v54, %v374_v6 }
 0x268   :  { %412 = vst [vmem:[#allocation7] sm:$0xff] %v404_v41  ;;  %413 = vst [vmem:[#allocation7 + $0x8] sm:$0xff] %v405_v10 }
 0x269   :  { %414 = vst [vmem:[#allocation7 + $0x10] sm:$0xff] %v406_v44  ;;  %415 = vst [vmem:[#allocation7 + $0x18] sm:$0xff] %v407_v7  ;;  %v408_v13 = vmax.f32 %v400_v8, 0.0  ;;  %v409_v14 = vmax.f32 %v401_v9, 0.0  ;;  %v410_v15 = vmax.f32 %v402_v11, 0.0  ;;  %v411_v16 = vmax.f32 %v403_v12, 0.0 }
 0x26b   :  { %416 = vst [vmem:[#allocation7 + $0x20] sm:$0xff] %v408_v13  ;;  %417 = vst [vmem:[#allocation7 + $0x28] sm:$0xff] %v409_v14 }
 0x26c   :  { %418 = vst [vmem:[#allocation7 + $0x30] sm:$0xff] %v410_v15  ;;  %419 = vst [vmem:[#allocation7 + $0x38] sm:$0xff] %v411_v16 }
 0x26d   :  { %569 = shalt.err (!%p566_p6)
}
 0x26e   :  { %s570_s27 = scalar_lea.hbm %s704_s5, 1024 }
 0x26f   :  { %p571_p7 = scmp.ne.s32.totalorder %s704_s5, %s570_s27  ;;  %p574_p8 = scmp.lt.u32.totalorder %s570_s27, %s704_s5 }
 0x271   :  { %p576_p9 = pnand %p574_p8, %p571_p7 }
 0x273   :  { %579 = shalt.err (!%p576_p9)
}
 0x274   :  { %431 = dma.vmem_to_hbm [thread:$0]  %s426_s4, 1024, %s704_s5, [#allocation4], %s590_s0, %s590_s0, %s591_s17  }
 0x275   :  { %584 = dma.done.wait [#allocation4], 1024  }
 0x276   :  { %585 = vsyncadd [#allocation4], 4294966272 }
 0x277   :  { %435 = vsyncpa [#allocation3], 1 }
 0x278   :  { %436 = vsyncpa [#allocation6], 1 }
 0x279   :  { %437 = vsyncpa [#allocation4], 1 }

</bundles_post_ra>
